<compile_context>
chip_gen: v7x
topology: tpu7x:2x2x1
jax: 0.10.0
libtpu: 0.0.40
codegen_flags: <defaults>
</compile_context>

<pallas_src>
import functools

import jax
import jax.numpy as jnp
from jax.experimental import pallas as pl
from jax.experimental.pallas import tpu as pltpu

SMOOTH_NR = 1e-5
SMOOTH_DR = 1e-5

LANES = 128            # vreg lane width
ROW_CAP = 128          # max rows per block (keeps vreg-resident accumulators spill-free)
SPATIAL_CAP = 8192     # max spatial tile width (64 chunks)
CHUNK_GROUP = 8        # chunks per fori_loop iteration (unrolled within the group)


def _vmem_capacity_bytes():
    """Best-effort physical VMEM query; conservative fallback (v7x per-TC)."""
    try:
        info = pltpu.get_tpu_info()
        for name in ("vmem_capacity_bytes", "vmem_bytes", "vmem_size_bytes"):
            v = getattr(info, name, None)
            if v:
                return int(v)
    except Exception:
        pass
    return 64 * 1024 * 1024


def _sum_chunks(x_ref, t_ref, rows, n_full, *, group, n_acc):
    """Accumulate n_full unmasked 128-lane chunks into register-resident partials.

    Returns (inter_parts, denom_parts): tuples of n_acc (rows, 128) f32 arrays.
    Uses a fori_loop over groups of `group` chunks (unrolled inside the group)
    to bound code size while keeping LLO scheduling visibility.
    """
    zeros = jnp.zeros((rows, LANES), jnp.float32)
    carry = ((zeros,) * n_acc, (zeros,) * n_acc)
    if n_full <= 0:
        return carry

    def add_chunk(carry, j, xs, ts):
        inter, denom = carry
        k = j % n_acc
        inter = tuple(v + xs * ts if i == k else v for i, v in enumerate(inter))
        denom = tuple(v + (xs + ts) if i == k else v for i, v in enumerate(denom))
        return inter, denom

    n_groups = n_full // group
    if n_groups > 0:
        def group_body(g, carry):
            base = g * (group * LANES)
            for j in range(group):
                start = pl.multiple_of(base + j * LANES, LANES)
                xs = x_ref[:, pl.ds(start, LANES)].astype(jnp.float32)
                ts = t_ref[:, pl.ds(start, LANES)].astype(jnp.float32)
                carry = add_chunk(carry, j, xs, ts)
            return carry

        carry = jax.lax.fori_loop(0, n_groups, group_body, carry)

    # Static remainder (fewer than `group` chunks).
    for j in range(n_groups * group, n_full):
        xs = x_ref[:, j * LANES:(j + 1) * LANES].astype(jnp.float32)
        ts = t_ref[:, j * LANES:(j + 1) * LANES].astype(jnp.float32)
        carry = add_chunk(carry, j, xs, ts)
    return carry


def _dice_kernel(x_ref, t_ref, f_ref, inter_acc, denom_acc, *,
                 n_chunks, tile_s, s_total, num_s, group, n_acc):
    """Grid = (row_block, spatial_block); spatial axis is the reduction axis."""
    s = pl.program_id(1)
    rows = inter_acc.shape[0]

    @pl.when(s == 0)
    def _init():
        inter_acc[...] = jnp.zeros_like(inter_acc)
        denom_acc[...] = jnp.zeros_like(denom_acc)

    def flush(parts):
        inter_parts, denom_parts = parts
        i_tot = inter_parts[0]
        for p in inter_parts[1:]:
            i_tot = i_tot + p
        d_tot = denom_parts[0]
        for p in denom_parts[1:]:
            d_tot = d_tot + p
        inter_acc[...] += i_tot
        denom_acc[...] += d_tot

    last_base = (num_s - 1) * tile_s
    tail_cols = s_total - last_base          # valid columns in the last block
    ragged = tail_cols < tile_s

    def steady():
        # Mask-free common path: pure vld + VPU mul/add.
        flush(_sum_chunks(x_ref, t_ref, rows, n_chunks, group=group, n_acc=n_acc))

    def tail():
        # Only on the last spatial step: statically skip chunks past S and mask
        # only the single straddling 128-lane chunk.
        n_full = tail_cols // LANES
        rem = tail_cols - n_full * LANES
        inter_parts, denom_parts = _sum_chunks(
            x_ref, t_ref, rows, n_full, group=group, n_acc=n_acc)
        if rem:
            j = n_full
            xs = x_ref[:, j * LANES:(j + 1) * LANES].astype(jnp.float32)
            ts = t_ref[:, j * LANES:(j + 1) * LANES].astype(jnp.float32)
            lane = jax.lax.broadcasted_iota(jnp.int32, (rows, LANES), 1)
            m = lane < rem
            xs = jnp.where(m, xs, 0.0)
            ts = jnp.where(m, ts, 0.0)
            k = j % n_acc
            inter_parts = tuple(v + xs * ts if i == k else v
                                for i, v in enumerate(inter_parts))
            denom_parts = tuple(v + (xs + ts) if i == k else v
                                for i, v in enumerate(denom_parts))
        flush((inter_parts, denom_parts))

    if not ragged:
        steady()
    elif num_s == 1:
        tail()
    else:
        pl.when(s < num_s - 1)(steady)
        pl.when(s == num_s - 1)(tail)

    @pl.when(s == num_s - 1)
    def _finalize():
        inter = jnp.sum(inter_acc[...], axis=-1, keepdims=True)
        denom = jnp.sum(denom_acc[...], axis=-1, keepdims=True)
        f_ref[...] = 1.0 - (2.0 * inter + SMOOTH_NR) / (denom + SMOOTH_DR)


def dice_loss_pallas(inp, target, *, spatial_tile=None):
    """inp, target: (B, N, H, W) arrays (any float dtype). Returns scalar mean Dice loss."""
    assert target.shape == inp.shape, "target must match input shape"
    B, N, H, W = inp.shape
    BN = B * N
    S = H * W

    x2 = inp.reshape(BN, S)       # stream in native dtype; cast to f32 in-kernel
    t2 = target.reshape(BN, S)

    # --- row tile -------------------------------------------------------------
    if BN > ROW_CAP:
        row_tile = ROW_CAP                      # multiple of 8; partial last block OK
    elif BN >= 16 and BN % 16 == 0:
        row_tile = BN // 2                      # >=2 row blocks -> v7x megacore can shard rows
    else:
        row_tile = BN                           # full-dim row block (exempt from /8 rule)

    # --- generation-aware VMEM budgets ---------------------------------------
    vmem_cap = _vmem_capacity_bytes()
    if vmem_cap >= 128 * 1024 * 1024:           # v5e / v6e
        in_buf_budget = 48 * 1024 * 1024
        vmem_limit = 96 * 1024 * 1024
    else:                                       # v7x (64 MiB per TC) or unknown
        in_buf_budget = 20 * 1024 * 1024
        vmem_limit = 32 * 1024 * 1024

    # --- spatial tile: largest multiple of 128 that fits the input budget ----
    bytes_per_col = 2 * row_tile * (x2.dtype.itemsize + t2.dtype.itemsize)  # 2 = double buffer
    budget_tile = max(LANES, (in_buf_budget // bytes_per_col) // LANES * LANES)
    s_ceil = pl.cdiv(S, LANES) * LANES
    tile_s = min(budget_tile, SPATIAL_CAP, s_ceil)
    if spatial_tile is not None:
        # Override is for testing path coverage; auto selection is preferred for perf.
        tile_s = min(max(LANES, (spatial_tile // LANES) * LANES), s_ceil)

    num_r = pl.cdiv(BN, row_tile)
    num_s = pl.cdiv(S, tile_s)
    n_chunks = tile_s // LANES
    # Interleave 2 partial accumulators per quantity only when the row tile is
    # small (little cross-row ILP); larger tiles keep a single set to avoid spills.
    n_acc = 2 if row_tile <= 32 else 1

    kernel = functools.partial(
        _dice_kernel,
        n_chunks=n_chunks,
        tile_s=tile_s,
        s_total=S,
        num_s=num_s,
        group=CHUNK_GROUP,
        n_acc=n_acc,
    )

    f = pl.pallas_call(
        kernel,
        out_shape=jax.ShapeDtypeStruct((BN, 1), jnp.float32),
        grid_spec=pltpu.PrefetchScalarGridSpec(
            num_scalar_prefetch=0,
            grid=(num_r, num_s),
            in_specs=[
                pl.BlockSpec((row_tile, tile_s), lambda r, s: (r, s)),
                pl.BlockSpec((row_tile, tile_s), lambda r, s: (r, s)),
            ],
            out_specs=pl.BlockSpec((row_tile, 1), lambda r, s: (r, 0)),
            scratch_shapes=[
                pltpu.VMEM((row_tile, LANES), jnp.float32),  # intersection acc
                pltpu.VMEM((row_tile, LANES), jnp.float32),  # denominator (t + x) acc
            ],
        ),
        compiler_params=pltpu.CompilerParams(
            dimension_semantics=("parallel", "arbitrary"),
            vmem_limit_bytes=vmem_limit,
        ),
    )(x2, t2)

    # reduction='mean': mean over all (batch, class) rows -> scalar.
    return jnp.mean(f[:, 0])


def dice_loss_ref(inp, target):
    """Pure-JAX reference mirroring the PyTorch forward (default config)."""
    x = inp.astype(jnp.float32)
    t = target.astype(jnp.float32)
    reduce_axis = (2, 3)
    intersection = jnp.sum(t * x, axis=reduce_axis)
    ground_o = jnp.sum(t, axis=reduce_axis)
    pred_o = jnp.sum(x, axis=reduce_axis)
    denominator = ground_o + pred_o
    f = 1.0 - (2.0 * intersection + SMOOTH_NR) / (denominator + SMOOTH_DR)
    return jnp.mean(f)


def _onehot_target(labels, num_classes, dtype):
    return jnp.transpose(jax.nn.one_hot(labels, num_classes, dtype=dtype), (0, 3, 1, 2))


if __name__ == "__main__":
    key = jax.random.PRNGKey(0)
    k1, k2, k3, k4, k5, k6 = jax.random.split(key, 6)

    # Case 1: small canonical shape, f32, single spatial tile, BN=8 (n_acc=2 path).
    B, C, H, W = 2, 4, 16, 16
    x = jax.random.uniform(k1, (B, C, H, W), dtype=jnp.float32)
    labels = jax.random.randint(k2, (B, H, W), 0, C)
    target = _onehot_target(labels, C, jnp.float32)
    loss = jax.block_until_ready(dice_loss_pallas(x, target))
    ref = dice_loss_ref(x, target)
    assert jnp.allclose(loss, ref, rtol=1e-5, atol=1e-6), (loss, ref)

    # Case 2: bf16 streaming, S=2048 in one auto-sized tile (exercises the grouped fori_loop).
    B2, C2, H2, W2 = 2, 4, 32, 64
    xb = jax.random.uniform(k3, (B2, C2, H2, W2), dtype=jnp.float32).astype(jnp.bfloat16)
    lab2 = jax.random.randint(k4, (B2, H2, W2), 0, C2)
    tb = _onehot_target(lab2, C2, jnp.bfloat16)
    loss2 = jax.block_until_ready(dice_loss_pallas(xb, tb))
    ref2 = dice_loss_ref(xb, tb)
    assert jnp.allclose(loss2, ref2, rtol=1e-4, atol=1e-5), (loss2, ref2)

    # Case 2b: same bf16 data, forced multi-step spatial accumulation (4 steady steps).
    loss2b = jax.block_until_ready(dice_loss_pallas(xb, tb, spatial_tile=512))
    assert jnp.allclose(loss2b, ref2, rtol=1e-4, atol=1e-5), (loss2b, ref2)

    # Case 3: ragged spatial extent (S=400, tile=256) -> steady step + masked straddle tail.
    B3, C3, H3, W3 = 2, 4, 20, 20
    x3 = jax.random.uniform(k3, (B3, C3, H3, W3), dtype=jnp.float32)
    lab3 = jax.random.randint(k4, (B3, H3, W3), 0, C3)
    t3 = _onehot_target(lab3, C3, jnp.float32)
    loss3 = jax.block_until_ready(dice_loss_pallas(x3, t3, spatial_tile=256))
    ref3 = dice_loss_ref(x3, t3)
    assert jnp.allclose(loss3, ref3, rtol=1e-5, atol=1e-6), (loss3, ref3)

    # Case 4: BN=16 -> row tile halved to 8 so two row blocks exist (v7x megacore path).
    B4, C4, H4, W4 = 4, 4, 16, 16
    x4 = jax.random.uniform(k5, (B4, C4, H4, W4), dtype=jnp.float32)
    lab4 = jax.random.randint(k6, (B4, H4, W4), 0, C4)
    t4 = _onehot_target(lab4, C4, jnp.float32)
    loss4 = jax.block_until_ready(dice_loss_pallas(x4, t4))
    ref4 = dice_loss_ref(x4, t4)
    assert jnp.allclose(loss4, ref4, rtol=1e-5, atol=1e-6), (loss4, ref4)

    # Case 5: BN=132 > ROW_CAP -> partial last row block (padded rows discarded on writeback).
    B5, C5, H5, W5 = 2, 66, 8, 16
    x5 = jax.random.uniform(k5, (B5, C5, H5, W5), dtype=jnp.float32)
    lab5 = jax.random.randint(k6, (B5, H5, W5), 0, C5)
    t5 = _onehot_target(lab5, C5, jnp.float32)
    loss5 = jax.block_until_ready(dice_loss_pallas(x5, t5))
    ref5 = dice_loss_ref(x5, t5)
    assert jnp.allclose(loss5, ref5, rtol=1e-5, atol=1e-6), (loss5, ref5)

    print("KERNEL_OK")
</pallas_src>

<mosaic_0001>
module attributes {stable_mosaic.version = 11 : i64} {
  func.func @_dice_kernel(%arg0: i32, %arg1: i32, %arg2: memref<8x256xf32, #tpu.memory_space<vmem>>, %arg3: memref<8x256xf32, #tpu.memory_space<vmem>>, %arg4: memref<8x1xf32, #tpu.memory_space<vmem>>, %arg5: memref<8x128xf32, #tpu.memory_space<vmem>>, %arg6: memref<8x128xf32, #tpu.memory_space<vmem>>) attributes {dimension_semantics = [#tpu.dimension_semantics<parallel>, #tpu.dimension_semantics<arbitrary>], iteration_bounds = array<i64: 1, 1>, scalar_prefetch = 0 : i64, scratch_operands = 2 : i64, tpu.core_type = #tpu.core_type<tc>, window_params = [{transform_indices = @transform_0, window_bounds = array<i64: 8, 256>}, {transform_indices = @transform_1, window_bounds = array<i64: 8, 256>}, {transform_indices = @transform_2, window_bounds = array<i64: 8, 1>}]} {
    %c0_i32 = arith.constant 0 : i32
    %0 = arith.cmpi eq, %arg1, %c0_i32 : i32
    %1 = arith.extui %0 : i1 to i32
    %c0_i32_0 = arith.constant 0 : i32
    %2 = arith.cmpi ne, %1, %c0_i32_0 : i32
    scf.if %2 {
      %cst_17 = arith.constant 0.000000e+00 : f32
      %27 = vector.broadcast %cst_17 : f32 to vector<8x128xf32>
      %c0_18 = arith.constant 0 : index
      %c0_19 = arith.constant 0 : index
      %28 = vector.load %arg5[%c0_18, %c0_19] : memref<8x128xf32, #tpu.memory_space<vmem>>, vector<8x128xf32>
      tpu.vector_store %arg5[%c0_18, %c0_19], %27 {strides = array<i32>} : memref<8x128xf32, #tpu.memory_space<vmem>>, vector<8x128xf32>,
      %cst_20 = arith.constant 0.000000e+00 : f32
      %29 = vector.broadcast %cst_20 : f32 to vector<8x128xf32>
      %c0_21 = arith.constant 0 : index
      %c0_22 = arith.constant 0 : index
      %30 = vector.load %arg6[%c0_21, %c0_22] : memref<8x128xf32, #tpu.memory_space<vmem>>, vector<8x128xf32>
      tpu.vector_store %arg6[%c0_21, %c0_22], %29 {strides = array<i32>} : memref<8x128xf32, #tpu.memory_space<vmem>>, vector<8x128xf32>,
    } else {
    }
    %cst = arith.constant 0.000000e+00 : f32
    %3 = vector.broadcast %cst : f32 to vector<8x128xf32>
    %c0 = arith.constant 0 : index
    %c0_1 = arith.constant 0 : index
    %4 = vector.load %arg2[%c0, %c0_1] : memref<8x256xf32, #tpu.memory_space<vmem>>, vector<8x128xf32>
    %c0_2 = arith.constant 0 : index
    %c0_3 = arith.constant 0 : index
    %5 = vector.load %arg3[%c0_2, %c0_3] : memref<8x256xf32, #tpu.memory_space<vmem>>, vector<8x128xf32>
    %6 = arith.mulf %4, %5 : vector<8x128xf32>
    %7 = arith.addf %3, %6 : vector<8x128xf32>
    %8 = arith.addf %4, %5 : vector<8x128xf32>
    %9 = arith.addf %3, %8 : vector<8x128xf32>
    %c0_4 = arith.constant 0 : index
    %c128 = arith.constant 128 : index
    %10 = vector.load %arg2[%c0_4, %c128] : memref<8x256xf32, #tpu.memory_space<vmem>>, vector<8x128xf32>
    %c0_5 = arith.constant 0 : index
    %c128_6 = arith.constant 128 : index
    %11 = vector.load %arg3[%c0_5, %c128_6] : memref<8x256xf32, #tpu.memory_space<vmem>>, vector<8x128xf32>
    %12 = arith.mulf %10, %11 : vector<8x128xf32>
    %13 = arith.addf %3, %12 : vector<8x128xf32>
    %14 = arith.addf %10, %11 : vector<8x128xf32>
    %15 = arith.addf %3, %14 : vector<8x128xf32>
    %16 = arith.addf %7, %13 : vector<8x128xf32>
    %17 = arith.addf %9, %15 : vector<8x128xf32>
    %c0_7 = arith.constant 0 : index
    %c0_8 = arith.constant 0 : index
    %18 = vector.load %arg5[%c0_7, %c0_8] : memref<8x128xf32, #tpu.memory_space<vmem>>, vector<8x128xf32>
    %19 = arith.addf %18, %16 : vector<8x128xf32>
    %c0_9 = arith.constant 0 : index
    %c0_10 = arith.constant 0 : index
    %20 = vector.load %arg5[%c0_9, %c0_10] : memref<8x128xf32, #tpu.memory_space<vmem>>, vector<8x128xf32>
    tpu.vector_store %arg5[%c0_9, %c0_10], %19 {strides = array<i32>} : memref<8x128xf32, #tpu.memory_space<vmem>>, vector<8x128xf32>,
    %c0_11 = arith.constant 0 : index
    %c0_12 = arith.constant 0 : index
    %21 = vector.load %arg6[%c0_11, %c0_12] : memref<8x128xf32, #tpu.memory_space<vmem>>, vector<8x128xf32>
    %22 = arith.addf %21, %17 : vector<8x128xf32>
    %c0_13 = arith.constant 0 : index
    %c0_14 = arith.constant 0 : index
    %23 = vector.load %arg6[%c0_13, %c0_14] : memref<8x128xf32, #tpu.memory_space<vmem>>, vector<8x128xf32>
    tpu.vector_store %arg6[%c0_13, %c0_14], %22 {strides = array<i32>} : memref<8x128xf32, #tpu.memory_space<vmem>>, vector<8x128xf32>,
    %c0_i32_15 = arith.constant 0 : i32
    %24 = arith.cmpi eq, %arg1, %c0_i32_15 : i32
    %25 = arith.extui %24 : i1 to i32
    %c0_i32_16 = arith.constant 0 : i32
    %26 = arith.cmpi ne, %25, %c0_i32_16 : i32
    scf.if %26 {
      %c0_17 = arith.constant 0 : index
      %c0_18 = arith.constant 0 : index
      %27 = vector.load %arg5[%c0_17, %c0_18] : memref<8x128xf32, #tpu.memory_space<vmem>>, vector<8x128xf32>
      %cst_19 = arith.constant dense<0.000000e+00> : vector<8xf32>
      %28 = vector.multi_reduction <add>, %27, %cst_19 [1] : vector<8x128xf32> to vector<8xf32>
      %29 = vector.shape_cast %28 : vector<8xf32> to vector<8x1xf32>
      %c0_20 = arith.constant 0 : index
      %c0_21 = arith.constant 0 : index
      %30 = vector.load %arg6[%c0_20, %c0_21] : memref<8x128xf32, #tpu.memory_space<vmem>>, vector<8x128xf32>
      %cst_22 = arith.constant dense<0.000000e+00> : vector<8xf32>
      %31 = vector.multi_reduction <add>, %30, %cst_22 [1] : vector<8x128xf32> to vector<8xf32>
      %32 = vector.shape_cast %31 : vector<8xf32> to vector<8x1xf32>
      %cst_23 = arith.constant 2.000000e+00 : f32
      %33 = vector.broadcast %cst_23 : f32 to vector<8x1xf32>
      %34 = arith.mulf %33, %29 : vector<8x1xf32>
      %cst_24 = arith.constant 9.99999974E-6 : f32
      %35 = vector.broadcast %cst_24 : f32 to vector<8x1xf32>
      %36 = arith.addf %34, %35 : vector<8x1xf32>
      %cst_25 = arith.constant 9.99999974E-6 : f32
      %37 = vector.broadcast %cst_25 : f32 to vector<8x1xf32>
      %38 = arith.addf %32, %37 : vector<8x1xf32>
      %39 = arith.divf %36, %38 : vector<8x1xf32>
      %cst_26 = arith.constant 1.000000e+00 : f32
      %40 = vector.broadcast %cst_26 : f32 to vector<8x1xf32>
      %41 = arith.subf %40, %39 : vector<8x1xf32>
      %c0_27 = arith.constant 0 : index
      %c0_28 = arith.constant 0 : index
      %42 = vector.load %arg4[%c0_27, %c0_28] : memref<8x1xf32, #tpu.memory_space<vmem>>, vector<8x1xf32>
      tpu.vector_store %arg4[%c0_27, %c0_28], %41 {strides = array<i32>} : memref<8x1xf32, #tpu.memory_space<vmem>>, vector<8x1xf32>,
    } else {
    }
    return
  }
  func.func @transform_0(%arg0: i32, %arg1: i32) -> (i32, i32) {
    %c0_i32 = arith.constant 0 : i32
    return %arg0, %arg1 : i32, i32
  }
  func.func @transform_1(%arg0: i32, %arg1: i32) -> (i32, i32) {
    %c0_i32 = arith.constant 0 : i32
    return %arg0, %arg1 : i32, i32
  }
  func.func @transform_2(%arg0: i32, %arg1: i32) -> (i32, i32) {
    %c0_i32 = arith.constant 0 : i32
    %c0_i32_0 = arith.constant 0 : i32
    return %arg0, %c0_i32 : i32, i32
  }
}

</mosaic_0001>

<bundles_post_ra>
// kernel: tpu_custom_call.1
= control target key start
LH: loop header
LB: loop body
LE: loop exit
PB: predicated region body
PF: predicated region fallthrough
CT: control target
= control target key end

     0   :  { %7 = vsyncpa [#allocation5], 0  ;;  %s180_s0 = inlined_call_operand.hbm [shape: f32[8,256], index: 0, kind: input, shape index: {}]   ;;  %s181_s1 = inlined_call_operand.hbm [shape: f32[8,256], index: 1, kind: input, shape index: {}]   ;;  %s182_s2 = inlined_call_operand.vmem [shape: f32[8,1], index: 2, kind: output, shape index: {}]  }
   0x1   :  { %8 = vsyncpa [#allocation7], 0  ;;  %s136_s9 = smov [#allocation4]   ;;  %s137_s11 = smov [#allocation6]  }
   0x2   :  { %s15_s10 = sshll.u32 %s136_s9, 4  ;;  %s25_s12 = sshll.u32 %s137_s11, 4  ;;  %s16_s10 = int_to_ptr.vmem [resolvable:$true] %s15_s10  ;;  %s26_s12 = int_to_ptr.vmem [resolvable:$true] %s25_s12 }
   0x3   :  { %s88_s15 = scalar_lea.hbm %s180_s0, 256 }
   0x4   :  { %p89_p0 = scmp.ne.s32.totalorder %s180_s0, %s88_s15  ;;  %p92_p1 = scmp.lt.u32.totalorder %s88_s15, %s180_s0 }
   0x6   :  { %p94_p2 = pnand %p92_p1, %p89_p0 }
   0x8   :  { %97 = shalt.err (!%p94_p2)
}
   0x9   :  { %s98_s20 = scalar_lea.vmem %s16_s10, 256  ;;  %p103_p4 = scmp.lt.s32.totalorder %s16_s10, %s16_s10 }
   0xa   :  { %p99_p3 = scmp.ne.s32.totalorder %s16_s10, %s98_s20  ;;  %p104_p5 = scmp.lt.s32.totalorder %s98_s20, %s98_s20 }
   0xc   :  { %p105_p6 = por %p104_p5, %p103_p4 }
   0xe   :  { %p106_p7 = pnand %p105_p6, %p99_p3 }
  0x10   :  { %109 = shalt.err (!%p106_p7)
}
  0x11   :  { %18 = dma.hbm_to_vmem [thread:$0]  %s180_s0, 256, %s16_s10, [#allocation5]  }
  0x12   :  { %s110_s25 = scalar_lea.hbm %s181_s1, 256 }
  0x13   :  { %p111_p8 = scmp.ne.s32.totalorder %s181_s1, %s110_s25  ;;  %p114_p9 = scmp.lt.u32.totalorder %s110_s25, %s181_s1 }
  0x15   :  { %p116_p10 = pnand %p114_p9, %p111_p8 }
  0x17   :  { %119 = shalt.err (!%p116_p10)
}
  0x18   :  { %s120_s30 = scalar_lea.vmem %s26_s12, 256  ;;  %p125_p12 = scmp.lt.s32.totalorder %s26_s12, %s26_s12 }
  0x19   :  { %p121_p11 = scmp.ne.s32.totalorder %s26_s12, %s120_s30  ;;  %p126_p13 = scmp.lt.s32.totalorder %s120_s30, %s120_s30 }
  0x1b   :  { %p127_p0 = por %p126_p13, %p125_p12 }
  0x1d   :  { %p128_p1 = pnand %p127_p0, %p121_p11 }
  0x1f   :  { %131 = shalt.err (!%p128_p1)
}
  0x20   :  { %28 = dma.hbm_to_vmem [thread:$0]  %s181_s1, 256, %s26_s12, [#allocation7]  }
  0x21   :  { %132 = dma.done.wait [#allocation5], 256  }
  0x22   :  { %133 = vsyncadd [#allocation5], 4294967040 }
  0x23   :  { %134 = dma.done.wait [#allocation7], 256  }
  0x24   :  { %135 = vsyncadd [#allocation7], 4294967040  ;;  %v41_v0 = vld [vmem:[#allocation4] sm:$0xff]  ;;  %v42_v1 = vld [vmem:[#allocation6] sm:$0xff]  ;;  %vm76_vm0 = vcmask 7168  }
  0x25   :  { %v47_v2 = vld [vmem:[#allocation4 + $0x8] sm:$0xff]  ;;  %v45_v3 = vadd.f32 %v42_v1, %v41_v0  ;;  %v48_v4 = vld [vmem:[#allocation6 + $0x8] sm:$0xff]  ;;  %v43_v6 = vmul.f32 %v42_v1, %v41_v0 }
  0x26   :  { %v51_v5 = vadd.f32 %v48_v4, %v47_v2  ;;  %v49_v7 = vmul.f32 %v48_v4, %v47_v2 }
  0x28   :  { %v54_v8 = vadd.f32 %v51_v5, %v45_v3  ;;  %v53_v9 = vadd.f32 %v49_v7, %v43_v6 }
  0x2a   :  { %68 = vadd.xlane.f32.xlu0 %v54_v8 }
  0x2e   :  { %65 = vadd.xlane.f32.xlu0 %v53_v9 }
  0xb7   :  { %v69_v10 = vpop.xlane.xlu0 %68 }
  0xb8   :  { %v72_v11 = vadd.f32 1e-05, %v69_v10 }
  0xba   :  { %86 = vrcp.f32 %v72_v11 }
  0xbb   :  { %v66_v12 = vpop.xlane.xlu0 %65 }
  0xbc   :  { %v70_v13 = vmul.f32 2.0, %v66_v12 }
  0xbe   :  { %v71_v14 = vadd.f32 1e-05, %v70_v13 }
  0xc4   :  { %v87_v15 = vpop.eup %86 }
  0xc5   :  { %v74_v16 = vmul.f32 %v87_v15, %v71_v14 }
  0xc7   :  { %v75_v17 = vsub.f32 1.0, %v74_v16 }
  0xc9   :  { %77 = vst.msk [vmem:[%s182_s2] sm:$0xff] %vm76_vm0, %v75_v17 }
  0xca   :  { %82 = vsyncpa [#allocation5], 1 }
  0xcb   :  { %83 = vsyncpa [#allocation7], 1 }

</bundles_post_ra>
